<compile_context>
chip_gen: v7x
topology: tpu7x:2x2x1
jax: 0.10.0
libtpu: 0.0.40
codegen_flags: <defaults>
</compile_context>

<pallas_src>
import functools

import jax
import jax.numpy as jnp
from jax import lax
from jax.experimental import pallas as pl
from jax.experimental.pallas import tpu as pltpu


def _round_up(x, m):
    return (x + m - 1) // m * m


@functools.lru_cache(maxsize=None)
def _vmem_config():
    """(vmem_limit_bytes, per-F-tile byte budget) keyed off the chip generation.

    v5e/v6e have 128 MiB physical VMEM per TensorCore, v7x has 64 MiB; the
    default *scoped* limit is much lower (16/32 MiB), so raise it explicitly
    and size the streamed F tile off the same number.
    """
    phys = 64 * 1024 * 1024                        # conservative default (= v7x)
    try:
        info = pltpu.get_tpu_info()
        cap = getattr(info, "vmem_capacity_bytes", None)
        if cap:
            phys = int(cap)
    except Exception:
        pass
    limit = min(phys * 3 // 4, 96 * 1024 * 1024)   # leave compiler headroom
    budget = min(limit // 4, 16 * 1024 * 1024)     # per (double-buffered) F tile
    return limit, budget


def _tile_n(m, n, itemsize, budget):
    """Reduction-tile width: multiple of 128, sized purely by the byte budget."""
    n128 = _round_up(n, 128)
    tn = (budget // (max(m, 1) * itemsize)) // 128 * 128
    return max(128, min(tn, n128))


def _prepare_features(x):
    """NCHW -> (M, N) view plus tiling parameters (no host-side padding pass)."""
    B, C, H, W = x.shape
    M, N = B * C, H * W
    f = x.reshape(M, N)                    # contiguous reshape, no extra HBM pass
    _, budget = _vmem_config()
    tn = _tile_n(M, N, jnp.dtype(x.dtype).itemsize, budget)
    n_steps = (N + tn - 1) // tn
    return f, M, N, tn, n_steps


def _load_masked_tile(f_ref, k, *, tn, n_cols):
    """Load the current (M, TN) slab; zero lanes past the true column count.

    Pallas has no bounds check on the ragged last tile, so out-of-range lanes
    hold garbage that must not reach the Gram accumulation. The select is only
    emitted when N is not a multiple of TN.
    """
    f = f_ref[...]                          # native dtype straight to the MXU
    if n_cols % tn != 0:
        valid = jnp.minimum(jnp.int32(n_cols) - k * jnp.int32(tn), jnp.int32(tn))
        lane = lax.broadcasted_iota(jnp.int32, f.shape, 1)
        f = jnp.where(lane < valid, f, jnp.zeros_like(f))
    return f


def _gram_kernel(f_ref, g_ref, *, inv_gram_denom, tn, n_cols):
    k = pl.program_id(0)

    @pl.when(k == 0)
    def _init():
        g_ref[...] = jnp.zeros_like(g_ref)

    f = _load_masked_tile(f_ref, k, tn=tn, n_cols=n_cols)
    # Accumulate directly into the VMEM-resident fp32 output block.
    g_ref[...] += lax.dot_general(
        f, f,
        dimension_numbers=(((1,), (1,)), ((), ())),   # F @ F.T, no transpose
        preferred_element_type=jnp.float32,
    )

    @pl.when(k == pl.num_programs(0) - 1)
    def _finalize():
        g_ref[...] = g_ref[...] * jnp.float32(inv_gram_denom)


def _style_loss_kernel(f_ref, tgt_hbm_ref, loss_ref, acc_ref, tgt_vmem_ref, *,
                       inv_gram_denom, inv_mse_denom, tn, n_cols):
    k = pl.program_id(0)

    @pl.when(k == 0)
    def _init():
        acc_ref[...] = jnp.zeros_like(acc_ref)

    f = _load_masked_tile(f_ref, k, tn=tn, n_cols=n_cols)
    acc_ref[...] += lax.dot_general(
        f, f,
        dimension_numbers=(((1,), (1,)), ((), ())),
        preferred_element_type=jnp.float32,
    )

    @pl.when(k == pl.num_programs(0) - 1)
    def _finalize():
        # Target gram stays in HBM for the whole grid; fetch it exactly once here
        # (avoids holding a double-buffered (M, M) copy in VMEM during the
        # entire reduction).
        pltpu.sync_copy(tgt_hbm_ref, tgt_vmem_ref)
        g = acc_ref[...] * jnp.float32(inv_gram_denom)
        d = g - tgt_vmem_ref[...].astype(jnp.float32)
        loss_ref[0, 0] = jnp.sum(d * d) * jnp.float32(inv_mse_denom)


def gram_matrix(x):
    """x: (B, C, H, W) -> gram matrix (B*C, B*C), float32."""
    f, M, N, tn, n_steps = _prepare_features(x)
    vmem_limit, _ = _vmem_config()
    kernel = functools.partial(
        _gram_kernel, inv_gram_denom=1.0 / (M * N), tn=tn, n_cols=N)
    return pl.pallas_call(
        kernel,
        out_shape=jax.ShapeDtypeStruct((M, M), jnp.float32),
        grid=(n_steps,),
        in_specs=[pl.BlockSpec((M, tn), lambda k: (0, k))],
        out_specs=pl.BlockSpec((M, M), lambda k: (0, 0)),
        compiler_params=pltpu.CompilerParams(
            dimension_semantics=("arbitrary",),
            vmem_limit_bytes=vmem_limit),
    )(f)


def style_loss_forward(x, target_gram):
    """Returns (x_passthrough, mse_loss(gram(x), target_gram))."""
    f, M, N, tn, n_steps = _prepare_features(x)
    vmem_limit, _ = _vmem_config()
    kernel = functools.partial(
        _style_loss_kernel,
        inv_gram_denom=1.0 / (M * N),
        inv_mse_denom=1.0 / (M * M),
        tn=tn, n_cols=N,
    )
    loss = pl.pallas_call(
        kernel,
        out_shape=jax.ShapeDtypeStruct((1, 1), jnp.float32),
        grid=(n_steps,),
        in_specs=[
            pl.BlockSpec((M, tn), lambda k: (0, k)),
            pl.BlockSpec(memory_space=pl.ANY),     # target gram stays in HBM
        ],
        out_specs=pl.BlockSpec(memory_space=pltpu.MemorySpace.SMEM),
        scratch_shapes=[
            pltpu.VMEM((M, M), jnp.float32),       # fp32 Gram accumulator
            pltpu.VMEM((M, M), jnp.float32),       # target landing buffer
        ],
        compiler_params=pltpu.CompilerParams(
            dimension_semantics=("arbitrary",),
            vmem_limit_bytes=vmem_limit),
    )(f, target_gram)
    # Module forward returns x unchanged (loss stored as a side attribute).
    return x, loss[0, 0]


class StyleLoss:
    """JAX/Pallas analogue of the PyTorch StyleLoss module."""

    def __init__(self, target_feature):
        self.target = gram_matrix(target_feature)  # detached target gram
        self.loss = None

    def __call__(self, x):
        x_out, loss = style_loss_forward(x, self.target)
        self.loss = loss
        return x_out


if __name__ == "__main__":
    key = jax.random.PRNGKey(0)
    k1, k2, k3, k4 = jax.random.split(key, 4)

    def ref_gram(t):
        a, b, c, d = t.shape
        fr = t.reshape(a * b, c * d)
        return (fr @ fr.T) / (a * b * c * d)

    # Main check: small NCHW feature map.
    B, C, H, W = 2, 4, 16, 16
    target_feature = jax.random.normal(k1, (B, C, H, W), dtype=jnp.float32)
    x = jax.random.normal(k2, (B, C, H, W), dtype=jnp.float32)

    module = StyleLoss(target_feature)
    out = jax.block_until_ready(module(x))
    loss = jax.block_until_ready(module.loss)

    ref_loss = jnp.mean((ref_gram(x) - ref_gram(target_feature)) ** 2)
    assert jnp.allclose(out, x), "forward must return x unchanged"
    assert jnp.allclose(loss, ref_loss, rtol=1e-4, atol=1e-6), (loss, ref_loss)

    # Ragged-N check: H*W not a multiple of the tile width exercises the
    # in-kernel last-tile mask (replaces the old host-side jnp.pad).
    Hr = Wr = 15
    tf_r = jax.random.normal(k3, (B, C, Hr, Wr), dtype=jnp.float32)
    x_r = jax.random.normal(k4, (B, C, Hr, Wr), dtype=jnp.float32)
    module_r = StyleLoss(tf_r)
    out_r = jax.block_until_ready(module_r(x_r))
    loss_r = jax.block_until_ready(module_r.loss)
    ref_loss_r = jnp.mean((ref_gram(x_r) - ref_gram(tf_r)) ** 2)
    assert jnp.allclose(out_r, x_r), "forward must return x unchanged (ragged)"
    assert jnp.allclose(loss_r, ref_loss_r, rtol=1e-4, atol=1e-6), (loss_r, ref_loss_r)

    print("KERNEL_OK")
</pallas_src>

<mosaic_0001>
module attributes {stable_mosaic.version = 11 : i64} {
  func.func @_gram_kernel(%arg0: i32, %arg1: memref<8x256xf32, #tpu.memory_space<vmem>>, %arg2: memref<8x8xf32, #tpu.memory_space<vmem>>) attributes {dimension_semantics = [#tpu.dimension_semantics<arbitrary>], iteration_bounds = array<i64: 1>, scalar_prefetch = 0 : i64, scratch_operands = 0 : i64, tpu.core_type = #tpu.core_type<tc>, window_params = [{transform_indices = @transform_0, window_bounds = array<i64: 8, 256>}, {pipeline_mode = #tpu.pipeline_mode<synchronous>, transform_indices = @transform_1, window_bounds = array<i64: 8, 8>}]} {
    %c0_i32 = arith.constant 0 : i32
    %0 = arith.cmpi eq, %arg0, %c0_i32 : i32
    %1 = arith.extui %0 : i1 to i32
    %c0_i32_0 = arith.constant 0 : i32
    %2 = arith.cmpi ne, %1, %c0_i32_0 : i32
    scf.if %2 {
      %cst_8 = arith.constant 0.000000e+00 : f32
      %11 = vector.broadcast %cst_8 : f32 to vector<8x8xf32>
      %c0_9 = arith.constant 0 : index
      %c0_10 = arith.constant 0 : index
      %12 = vector.load %arg2[%c0_9, %c0_10] : memref<8x8xf32, #tpu.memory_space<vmem>>, vector<8x8xf32>
      tpu.vector_store %arg2[%c0_9, %c0_10], %11 {strides = array<i32>} : memref<8x8xf32, #tpu.memory_space<vmem>>, vector<8x8xf32>,
    } else {
    }
    %c0 = arith.constant 0 : index
    %c0_1 = arith.constant 0 : index
    %3 = vector.load %arg1[%c0, %c0_1] : memref<8x256xf32, #tpu.memory_space<vmem>>, vector<8x256xf32>
    %c0_2 = arith.constant 0 : index
    %c0_3 = arith.constant 0 : index
    %4 = vector.load %arg2[%c0_2, %c0_3] : memref<8x8xf32, #tpu.memory_space<vmem>>, vector<8x8xf32>
    %cst = arith.constant dense<0.000000e+00> : vector<8x8xf32>
    %5 = tpu.matmul %3, %3, %cst {dimension_numbers = #tpu.dot_dimension_numbers<[1], [1], [0], [0], [0, 0, 1, 0], [], []>} : vector<8x256xf32>, vector<8x256xf32>, vector<8x8xf32> -> vector<8x8xf32>
    %6 = arith.addf %4, %5 : vector<8x8xf32>
    %c0_4 = arith.constant 0 : index
    %c0_5 = arith.constant 0 : index
    %7 = vector.load %arg2[%c0_4, %c0_5] : memref<8x8xf32, #tpu.memory_space<vmem>>, vector<8x8xf32>
    tpu.vector_store %arg2[%c0_4, %c0_5], %6 {strides = array<i32>} : memref<8x8xf32, #tpu.memory_space<vmem>>, vector<8x8xf32>,
    %c0_i32_6 = arith.constant 0 : i32
    %8 = arith.cmpi eq, %arg0, %c0_i32_6 : i32
    %9 = arith.extui %8 : i1 to i32
    %c0_i32_7 = arith.constant 0 : i32
    %10 = arith.cmpi ne, %9, %c0_i32_7 : i32
    scf.if %10 {
      %c0_8 = arith.constant 0 : index
      %c0_9 = arith.constant 0 : index
      %11 = vector.load %arg2[%c0_8, %c0_9] : memref<8x8xf32, #tpu.memory_space<vmem>>, vector<8x8xf32>
      %cst_10 = arith.constant 4.8828125E-4 : f32
      %12 = vector.broadcast %cst_10 : f32 to vector<8x8xf32>
      %13 = arith.mulf %11, %12 : vector<8x8xf32>
      %c0_11 = arith.constant 0 : index
      %c0_12 = arith.constant 0 : index
      %14 = vector.load %arg2[%c0_11, %c0_12] : memref<8x8xf32, #tpu.memory_space<vmem>>, vector<8x8xf32>
      tpu.vector_store %arg2[%c0_11, %c0_12], %13 {strides = array<i32>} : memref<8x8xf32, #tpu.memory_space<vmem>>, vector<8x8xf32>,
    } else {
    }
    return
  }
  func.func @transform_0(%arg0: i32) -> (i32, i32) {
    %c0_i32 = arith.constant 0 : i32
    %c0_i32_0 = arith.constant 0 : i32
    return %c0_i32, %arg0 : i32, i32
  }
  func.func @transform_1(%arg0: i32) -> (i32, i32) {
    %c0_i32 = arith.constant 0 : i32
    %c0_i32_0 = arith.constant 0 : i32
    %c0_i32_1 = arith.constant 0 : i32
    return %c0_i32, %c0_i32_0 : i32, i32
  }
}

</mosaic_0001>

<bundles_post_ra>
// kernel: tpu_custom_call.1
= control target key start
LH: loop header
LB: loop body
LE: loop exit
PB: predicated region body
PF: predicated region fallthrough
CT: control target
= control target key end

     0   :  { %6 = vsyncpa [#allocation3], 0  ;;  %s215_s0 = inlined_call_operand.hbm [shape: f32[8,256], index: 0, kind: input, shape index: {}]   ;;  %s216_s1 = inlined_call_operand.hbm [shape: f32[8,8], index: 1, kind: output, shape index: {}]  }
   0x1   :  { %7 = vsyncpa [#allocation4], 0  ;;  %s175_s6 = smov [#allocation2]   ;;  %s127_s10 = scalar_lea.hbm %s215_s0, 256 }
   0x2   :  { %s14_s7 = sshll.u32 %s175_s6, 4  ;;  %p128_p0 = scmp.ne.s32.totalorder %s215_s0, %s127_s10  ;;  %s15_s7 = int_to_ptr.vmem [resolvable:$true] %s14_s7 }
   0x3   :  { %p131_p1 = scmp.lt.u32.totalorder %s127_s10, %s215_s0 }
   0x5   :  { %p133_p2 = pnand %p131_p1, %p128_p0 }
   0x7   :  { %136 = shalt.err (!%p133_p2)
}
   0x8   :  { %s137_s15 = scalar_lea.vmem %s15_s7, 256  ;;  %p142_p4 = scmp.lt.s32.totalorder %s15_s7, %s15_s7 }
   0x9   :  { %p138_p3 = scmp.ne.s32.totalorder %s15_s7, %s137_s15  ;;  %p143_p5 = scmp.lt.s32.totalorder %s137_s15, %s137_s15 }
   0xb   :  { %p144_p6 = por %p143_p5, %p142_p4 }
   0xd   :  { %p145_p7 = pnand %p144_p6, %p138_p3 }
   0xf   :  { %148 = shalt.err (!%p145_p7)
}
  0x10   :  { %17 = dma.hbm_to_vmem [thread:$0]  %s215_s0, 256, %s15_s7, [#allocation3]  }
  0x11   :  { %171 = dma.done.wait [#allocation3], 256  }
  0x12   :  { %172 = vsyncadd [#allocation3], 4294967040  ;;  %vm25_vm0 = vcmask 64512   ;;  %v176_v0 = vmov 0.0   ;;  %v28_v1 = vld [vmem:[#allocation2 + $0x8] sm:$0xff]  ;;  %v27_v2 = vld [vmem:[#allocation2] sm:$0xff] }
  0x13   :  { %26 = vst.msk [vmem:[#allocation5] sm:$0xff] %vm25_vm0, %v176_v0  ;;  %30 = vmatprep.subr.mxu0 %v28_v1  ;;  %94 = vmatprep.mubr.f32.mxu0 %v28_v1  ;;  %s177_s18 = smov [#allocation5]  }
  0x14   :  { %31 = vmatpush1.xpose.msra.mxu0 %v27_v2  ;;  %s115_s0 = sshll.u32 %s177_s18, 4  ;;  %s116_s0 = int_to_ptr.vmem [resolvable:$true] %s115_s0 }
  0x15   :  { %s149_s19 = scalar_lea.vmem %s116_s0, 128  ;;  %p154_p9 = scmp.lt.s32.totalorder %s116_s0, %s116_s0 }
  0x16   :  { %p150_p8 = scmp.ne.s32.totalorder %s116_s0, %s149_s19  ;;  %p155_p10 = scmp.lt.s32.totalorder %s149_s19, %s149_s19 }
  0x17   :  { %95 = vmatmul.mubr.f32.vlgmr.msra.gmra.mrb[0].mxu0 %v27_v2 }
  0x18   :  { %p156_p11 = por %p155_p10, %p154_p9 }
  0x1a   :  { %v29_v3 = vld [vmem:[#allocation5] sm:$0xff]  ;;  %p157_p12 = pnand %p156_p11, %p150_p8 }
  0xea   :  { %v96_v4 = vpop.f32.mrb[0].mxu0 }
  0xeb   :  { %v100_v5 = vadd.f32 %v96_v4, %v29_v3  ;;  %v98_v6 = vpop.f32.mrb[1].mxu0 }
  0xed   :  { %102 = vst.msk [vmem:[#allocation5] sm:$0xff] %vm25_vm0, %v100_v5 }
  0xf4   :  { %v106_v7 = vld [vmem:[#allocation5] sm:$0xff] }
  0xf5   :  { %v107_v8 = vmul.f32 0.00048828125, %v106_v7 }
  0xf7   :  { %108 = vst.msk [vmem:[#allocation5] sm:$0xff] %vm25_vm0, %v107_v8 }
  0xf8   :  { %160 = shalt.err (!%p157_p12)
}
  0xf9   :  { %s161_s22 = scalar_lea.hbm %s216_s1, 128 }
  0xfa   :  { %p162_p13 = scmp.ne.s32.totalorder %s216_s1, %s161_s22  ;;  %p165_p0 = scmp.lt.u32.totalorder %s161_s22, %s216_s1 }
  0xfc   :  { %p167_p1 = pnand %p165_p0, %p162_p13 }
  0xfe   :  { %170 = shalt.err (!%p167_p1)
}
  0xff   :  { %118 = dma.vmem_to_hbm [thread:$0]  %s116_s0, 128, %s216_s1, [#allocation4]  }
 0x100   :  { %173 = dma.done.wait [#allocation4], 128  }
 0x101   :  { %174 = vsyncadd [#allocation4], 4294967168 }
 0x102   :  { %122 = vsyncpa [#allocation3], 1 }
 0x103   :  { %123 = vsyncpa [#allocation4], 1 }

</bundles_post_ra>
